<compile_context>
chip_gen: v7x
topology: tpu7x:2x2x1
jax: 0.10.0
libtpu: 0.0.40
codegen_flags: <defaults>
</compile_context>

<pallas_src>
import jax
import jax.numpy as jnp
from jax.experimental import pallas as pl
from jax.experimental.pallas import tpu as pltpu


def _tcn_kernel(x_ref, w_ref, scale_ref, shift_ref, o_ref):
    # x_ref:     (1, 1, Cin, TM + 2V)  haloed row-tile, channels on the contraction axis
    # w_ref:     (Cout, 3*Cin)         fused conv taps (resident across the grid)
    # scale_ref: (Cout, 1)             folded BN scale = gamma / sqrt(var + eps)
    # shift_ref: (Cout, 1)             folded BN shift = beta - mean * scale
    # o_ref:     (1, Cout, TM)
    tm = o_ref.shape[2]
    v = (x_ref.shape[3] - tm) // 2

    # Dropout(p=0.5) is identity in eval mode -> nothing to do.
    # TODO(synk): training-mode dropout masking and BatchNorm batch-statistics update are
    # not implemented; this kernel is the inference-mode forward pass.

    # Fuse the 3 temporal taps into one deep matmul: (Cout, 3Cin) @ (3Cin, TM).
    # Tap k for output row m lives at slab column k*V + m (static slices only).
    xt = jnp.concatenate(
        [x_ref[0, 0, :, k * v:k * v + tm] for k in range(3)], axis=0)      # (3Cin, TM)
    acc = jnp.dot(w_ref[...], xt, preferred_element_type=jnp.float32)       # (Cout, TM) f32

    # Mish with a single transcendental:
    #   e = exp(-|y|);  tanh(softplus(y)) = (1+2e)/(1+2e+2e^2)  if y>=0
    #                                      = (2e+e^2)/(2+2e+e^2) if y<0
    e = jnp.exp(-jnp.abs(acc))
    g = e * (e + 2.0)
    pos = acc >= 0.0
    num = jnp.where(pos, 1.0 + 2.0 * e, g)
    den = num + jnp.where(pos, 2.0 * e * e, 2.0)
    r = pl.reciprocal(den, approx=True)
    r = r * (2.0 - den * r)                      # one Newton step -> ~f32-exact reciprocal
    y = acc * num * r

    # Inference BatchNorm folded into one FMA, broadcast along the lane (row) axis.
    y = y * scale_ref[...] + shift_ref[...]
    o_ref[0] = y.astype(o_ref.dtype)


def _pick_block_rows(rows, requested=None):
    """Pick the output row tile: a multiple of 128 that divides rows (lane-dense stores)."""
    if (requested is not None and 0 < requested <= rows and rows % requested == 0
            and (requested % 128 == 0 or requested == rows)):
        return requested
    best = rows                                  # fallback: single tile (full-dim block)
    m = 128
    while m <= min(rows, 1024):
        if rows % m == 0:
            best = m
        m += 128
    return best


def tcn_forward(x, w, gamma, beta, running_mean, running_var, *, eps=1e-5, block_rows=None):
    """Inference forward of the TCN block.

    x: (N, Cin, T, V)   input, PyTorch NCHW layout
    w: (Cout, Cin, 3, 1) conv weight, PyTorch layout
    gamma/beta/running_mean/running_var: (Cout,) BatchNorm2d params / running stats
    returns (N, Cout, T, V)
    """
    N, Cin, T, V = x.shape
    Cout = w.shape[0]
    R = T * V
    TM = _pick_block_rows(R, block_rows)
    n_tiles = R // TM
    TW = TM + 2 * V                              # row tile + one-frame halo on each side

    # Fused-tap weight: w_fused[co, k*Cin + ci] = w[co, ci, k, 0]
    w_fused = jnp.transpose(w[..., 0], (0, 2, 1)).reshape(Cout, 3 * Cin).astype(x.dtype)

    inv_std = 1.0 / jnp.sqrt(running_var.astype(jnp.float32) + eps)
    scale = (gamma.astype(jnp.float32) * inv_std).reshape(Cout, 1)
    shift = (beta.astype(jnp.float32)
             - running_mean.astype(jnp.float32) * gamma.astype(jnp.float32) * inv_std
             ).reshape(Cout, 1)

    # Row-tiled, halo-included slabs (channels-on-contraction, no transposes):
    # slab j = x_eff[:, j*TM - V : j*TM + TM + V] where x_eff is x zero-extended by one
    # frame (V rows) on each side of the flattened (t*V + v) axis.
    x2 = x.reshape(N, Cin, R)                                       # free reshape
    xp = jnp.pad(x2, ((0, 0), (0, 0), (V, V)))
    slabs = jnp.stack([xp[:, :, j * TM:j * TM + TW] for j in range(n_tiles)], axis=1)

    itx = jnp.dtype(x.dtype).itemsize
    xb = Cin * TW * itx                          # per-step input block
    ob = Cout * TM * itx                         # per-step output block
    wb = Cout * 3 * Cin * itx + 2 * Cout * 4     # resident weights + BN scale/shift
    vmem_limit = int(min(max(2 * (xb + ob) + wb + (12 << 20), 16 << 20), 64 << 20))

    cost = pl.CostEstimate(
        flops=2 * N * R * 3 * Cin * Cout,
        transcendentals=2 * N * R * Cout,        # exp + reciprocal per output element
        bytes_accessed=(slabs.size * itx + Cout * 3 * Cin * itx
                        + N * R * Cout * itx + 2 * Cout * 4),
    )

    out = pl.pallas_call(
        _tcn_kernel,
        out_shape=jax.ShapeDtypeStruct((N, Cout, R), x.dtype),
        grid_spec=pltpu.PrefetchScalarGridSpec(
            num_scalar_prefetch=0,
            grid=(N, n_tiles),                                       # all steps independent
            in_specs=[
                pl.BlockSpec((1, 1, Cin, TW), lambda i, j: (i, j, 0, 0)),   # haloed x tile
                pl.BlockSpec((Cout, 3 * Cin), lambda i, j: (0, 0)),          # fused taps
                pl.BlockSpec((Cout, 1), lambda i, j: (0, 0)),                # BN scale
                pl.BlockSpec((Cout, 1), lambda i, j: (0, 0)),                # BN shift
            ],
            out_specs=pl.BlockSpec((1, Cout, TM), lambda i, j: (i, 0, j)),
        ),
        compiler_params=pltpu.CompilerParams(
            dimension_semantics=("parallel", "parallel"),
            vmem_limit_bytes=vmem_limit,
        ),
        cost_estimate=cost,
    )(slabs, w_fused, scale, shift)

    return out.reshape(N, Cout, T, V)            # free reshape, no transpose


def _reference(x, w_torch, gamma, beta, mean, var, eps=1e-5):
    """Pure-JAX reference of the inference forward (conv -> Mish -> BN)."""
    N, Cin, T, V = x.shape
    xp = jnp.pad(x, ((0, 0), (0, 0), (1, 1), (0, 0)))
    y = jnp.zeros((N, w_torch.shape[0], T, V), jnp.float32)
    for k in range(3):
        y = y + jnp.einsum("ncts,oc->nots", xp[:, :, k:k + T, :], w_torch[:, :, k, 0],
                           precision=jax.lax.Precision.HIGHEST)
    y = y * jnp.tanh(jax.nn.softplus(y))                             # Mish
    scale = gamma / jnp.sqrt(var + eps)
    shift = beta - mean * scale
    return y * scale[None, :, None, None] + shift[None, :, None, None]


if __name__ == "__main__":
    # Small shapes consistent with the module: x [n, in_c, t, v]; T*V = 512 -> 2 row tiles.
    N, Cin, Cout, T, V = 2, 16, 32, 32, 16

    key = jax.random.PRNGKey(0)
    kx, kw, kg, kb, km, kv = jax.random.split(key, 6)

    x = jax.random.normal(kx, (N, Cin, T, V), dtype=jnp.float32)

    lim = 1.0 / jnp.sqrt(jnp.float32(Cin * 3))
    w_torch = jax.random.uniform(kw, (Cout, Cin, 3, 1), minval=-lim, maxval=lim,
                                 dtype=jnp.float32)
    gamma = jax.random.uniform(kg, (Cout,), minval=0.5, maxval=1.5, dtype=jnp.float32)
    beta = 0.1 * jax.random.normal(kb, (Cout,), dtype=jnp.float32)
    running_mean = 0.1 * jax.random.normal(km, (Cout,), dtype=jnp.float32)
    running_var = jax.random.uniform(kv, (Cout,), minval=0.5, maxval=1.5, dtype=jnp.float32)

    out = tcn_forward(x, w_torch, gamma, beta, running_mean, running_var, block_rows=256)
    out = jax.block_until_ready(out)

    ref = _reference(x, w_torch, gamma, beta, running_mean, running_var)
    assert out.shape == (N, Cout, T, V)
    assert jnp.allclose(out, ref, atol=2e-3, rtol=2e-3), "mismatch vs reference"

    print("KERNEL_OK")
</pallas_src>

<mosaic_0001>
module attributes {stable_mosaic.version = 11 : i64} {
  func.func @_tcn_kernel(%arg0: i32, %arg1: i32, %arg2: memref<1x1x16x288xf32, #tpu.memory_space<vmem>>, %arg3: memref<32x48xf32, #tpu.memory_space<vmem>>, %arg4: memref<32x1xf32, #tpu.memory_space<vmem>>, %arg5: memref<32x1xf32, #tpu.memory_space<vmem>>, %arg6: memref<1x32x256xf32, #tpu.memory_space<vmem>>) attributes {dimension_semantics = [#tpu.dimension_semantics<parallel>, #tpu.dimension_semantics<parallel>], iteration_bounds = array<i64: 2, 2>, scalar_prefetch = 0 : i64, scratch_operands = 0 : i64, tpu.core_type = #tpu.core_type<tc>, window_params = [{transform_indices = @transform_0, window_bounds = array<i64: 1, 1, 16, 288>}, {pipeline_mode = #tpu.pipeline_mode<synchronous>, transform_indices = @transform_1, window_bounds = array<i64: 32, 48>}, {pipeline_mode = #tpu.pipeline_mode<synchronous>, transform_indices = @transform_2, window_bounds = array<i64: 32, 1>}, {pipeline_mode = #tpu.pipeline_mode<synchronous>, transform_indices = @transform_3, window_bounds = array<i64: 32, 1>}, {transform_indices = @transform_4, window_bounds = array<i64: 1, 32, 256>}]} {
    %c0 = arith.constant 0 : index
    %c0_0 = arith.constant 0 : index
    %c0_1 = arith.constant 0 : index
    %c0_2 = arith.constant 0 : index
    %0 = vector.load %arg2[%c0, %c0_0, %c0_1, %c0_2] : memref<1x1x16x288xf32, #tpu.memory_space<vmem>>, vector<1x1x16x256xf32>
    %1 = vector.shape_cast %0 : vector<1x1x16x256xf32> to vector<16x256xf32>
    %c0_3 = arith.constant 0 : index
    %c0_4 = arith.constant 0 : index
    %c0_5 = arith.constant 0 : index
    %c16 = arith.constant 16 : index
    %2 = vector.load %arg2[%c0_3, %c0_4, %c0_5, %c16] : memref<1x1x16x288xf32, #tpu.memory_space<vmem>>, vector<1x1x16x256xf32>
    %3 = vector.shape_cast %2 : vector<1x1x16x256xf32> to vector<16x256xf32>
    %c0_6 = arith.constant 0 : index
    %c0_7 = arith.constant 0 : index
    %c0_8 = arith.constant 0 : index
    %c32 = arith.constant 32 : index
    %4 = vector.load %arg2[%c0_6, %c0_7, %c0_8, %c32] : memref<1x1x16x288xf32, #tpu.memory_space<vmem>>, vector<1x1x16x256xf32>
    %5 = vector.shape_cast %4 : vector<1x1x16x256xf32> to vector<16x256xf32>
    %6 = tpu.concatenate %1, %3, %5 in 0 : vector<16x256xf32>, vector<16x256xf32>, vector<16x256xf32> -> vector<48x256xf32>
    %c0_9 = arith.constant 0 : index
    %c0_10 = arith.constant 0 : index
    %7 = vector.load %arg3[%c0_9, %c0_10] : memref<32x48xf32, #tpu.memory_space<vmem>>, vector<32x48xf32>
    %cst = arith.constant dense<0.000000e+00> : vector<32x256xf32>
    %8 = tpu.matmul %7, %6, %cst {dimension_numbers = #tpu.dot_dimension_numbers<[1], [0], [0], [1], [0, 0, 1, 1], [], []>} : vector<32x48xf32>, vector<48x256xf32>, vector<32x256xf32> -> vector<32x256xf32>
    %9 = math.absf %8 : vector<32x256xf32>
    %cst_11 = arith.constant 0.000000e+00 : f32
    %10 = vector.broadcast %cst_11 : f32 to vector<32x256xf32>
    %11 = arith.subf %10, %9 : vector<32x256xf32>
    %12 = math.exp %11 : vector<32x256xf32>
    %cst_12 = arith.constant 2.000000e+00 : f32
    %13 = vector.broadcast %cst_12 : f32 to vector<32x256xf32>
    %14 = arith.addf %12, %13 : vector<32x256xf32>
    %15 = arith.mulf %12, %14 : vector<32x256xf32>
    %cst_13 = arith.constant 0.000000e+00 : f32
    %16 = vector.broadcast %cst_13 : f32 to vector<32x256xf32>
    %17 = arith.cmpf oge, %8, %16 : vector<32x256xf32>
    %cst_14 = arith.constant 2.000000e+00 : f32
    %18 = vector.broadcast %cst_14 : f32 to vector<32x256xf32>
    %19 = arith.mulf %18, %12 : vector<32x256xf32>
    %cst_15 = arith.constant 1.000000e+00 : f32
    %20 = vector.broadcast %cst_15 : f32 to vector<32x256xf32>
    %21 = arith.addf %20, %19 : vector<32x256xf32>
    %22 = arith.select %17, %21, %15 : vector<32x256xi1>, vector<32x256xf32>
    %cst_16 = arith.constant 2.000000e+00 : f32
    %23 = vector.broadcast %cst_16 : f32 to vector<32x256xf32>
    %24 = arith.mulf %23, %12 : vector<32x256xf32>
    %25 = arith.mulf %24, %12 : vector<32x256xf32>
    %cst_17 = arith.constant 2.000000e+00 : f32
    %26 = vector.broadcast %cst_17 : f32 to vector<32x256xf32>
    %27 = arith.select %17, %25, %26 : vector<32x256xi1>, vector<32x256xf32>
    %28 = arith.addf %22, %27 : vector<32x256xf32>
    %29 = tpu.reciprocal %28 {approx = true} : vector<32x256xf32> -> vector<32x256xf32>
    %30 = arith.mulf %28, %29 : vector<32x256xf32>
    %cst_18 = arith.constant 2.000000e+00 : f32
    %31 = vector.broadcast %cst_18 : f32 to vector<32x256xf32>
    %32 = arith.subf %31, %30 : vector<32x256xf32>
    %33 = arith.mulf %29, %32 : vector<32x256xf32>
    %34 = arith.mulf %8, %22 : vector<32x256xf32>
    %35 = arith.mulf %34, %33 : vector<32x256xf32>
    %c0_19 = arith.constant 0 : index
    %c0_20 = arith.constant 0 : index
    %36 = vector.load %arg4[%c0_19, %c0_20] : memref<32x1xf32, #tpu.memory_space<vmem>>, vector<32x1xf32>
    %37 = vector.broadcast %36 : vector<32x1xf32> to vector<32x256xf32>
    %38 = arith.mulf %35, %37 : vector<32x256xf32>
    %c0_21 = arith.constant 0 : index
    %c0_22 = arith.constant 0 : index
    %39 = vector.load %arg5[%c0_21, %c0_22] : memref<32x1xf32, #tpu.memory_space<vmem>>, vector<32x1xf32>
    %40 = vector.broadcast %39 : vector<32x1xf32> to vector<32x256xf32>
    %41 = arith.addf %38, %40 : vector<32x256xf32>
    %c0_23 = arith.constant 0 : index
    %c0_24 = arith.constant 0 : index
    %c0_25 = arith.constant 0 : index
    %42 = vector.load %arg6[%c0_23, %c0_24, %c0_25] : memref<1x32x256xf32, #tpu.memory_space<vmem>>, vector<1x32x256xf32>
    %43 = vector.shape_cast %42 : vector<1x32x256xf32> to vector<32x256xf32>
    %44 = vector.shape_cast %41 : vector<32x256xf32> to vector<1x32x256xf32>
    tpu.vector_store %arg6[%c0_23, %c0_24, %c0_25], %44 {strides = array<i32>} : memref<1x32x256xf32, #tpu.memory_space<vmem>>, vector<1x32x256xf32>,
    return
  }
  func.func @transform_0(%arg0: i32, %arg1: i32) -> (i32, i32, i32, i32) {
    %c0_i32 = arith.constant 0 : i32
    %c0_i32_0 = arith.constant 0 : i32
    %c0_i32_1 = arith.constant 0 : i32
    return %arg0, %arg1, %c0_i32, %c0_i32_0 : i32, i32, i32, i32
  }
  func.func @transform_1(%arg0: i32, %arg1: i32) -> (i32, i32) {
    %c0_i32 = arith.constant 0 : i32
    %c0_i32_0 = arith.constant 0 : i32
    %c0_i32_1 = arith.constant 0 : i32
    return %c0_i32, %c0_i32_0 : i32, i32
  }
  func.func @transform_2(%arg0: i32, %arg1: i32) -> (i32, i32) {
    %c0_i32 = arith.constant 0 : i32
    %c0_i32_0 = arith.constant 0 : i32
    %c0_i32_1 = arith.constant 0 : i32
    return %c0_i32, %c0_i32_0 : i32, i32
  }
  func.func @transform_3(%arg0: i32, %arg1: i32) -> (i32, i32) {
    %c0_i32 = arith.constant 0 : i32
    %c0_i32_0 = arith.constant 0 : i32
    %c0_i32_1 = arith.constant 0 : i32
    return %c0_i32, %c0_i32_0 : i32, i32
  }
  func.func @transform_4(%arg0: i32, %arg1: i32) -> (i32, i32, i32) {
    %c0_i32 = arith.constant 0 : i32
    %c0_i32_0 = arith.constant 0 : i32
    return %arg0, %c0_i32, %arg1 : i32, i32, i32
  }
}

</mosaic_0001>

<bundles_post_ra>
// kernel: tpu_custom_call.1
= control target key start
LH: loop header
LB: loop body
LE: loop exit
PB: predicated region body
PF: predicated region fallthrough
CT: control target
= control target key end

     0   :  { %9 = vsyncpa [#allocation3], 0  ;;  %s1420_s0 = inlined_call_operand.hbm [shape: f32[2,2,16,288], index: 0, kind: input, shape index: {}]   ;;  %s1421_s1 = inlined_call_operand.vmem [shape: f32[32,48], index: 1, kind: input, shape index: {}]   ;;  %s1422_s2 = inlined_call_operand.vmem [shape: f32[32,1], index: 2, kind: input, shape index: {}]   ;;  %s1423_s3 = inlined_call_operand.vmem [shape: f32[32,1], index: 3, kind: input, shape index: {}]   ;;  %s1424_s4 = inlined_call_operand.hbm [shape: f32[2,32,512], index: 4, kind: output, shape index: {}]  }
   0x1   :  { %11 = vsyncpa [#allocation3 + $0x1], 0 }
   0x2   :  { %12 = vsyncpa [#allocation4], 0 }
   0x3   :  { %14 = vsyncpa [#allocation4 + $0x1], 0  ;;  %s1081_s15 = smov 0   ;;  %s1083_s16 = smov 0  }
   0x4   :  { %s1085_s17 = smov 0   ;;  %s1087_s18 = smov 0  }
   0x5   :  { %s1089_s19 = smov 0   ;;  %s1091_s20 = smov 0  }
   0x6   :  { %s1093_s21 = smov 0   ;;  %s1095_s22 = smov 0  }
   0x7 LB: > { %s725_s23 = sadd.s32 4294967295, %s1043_s22   ;;  %s726_s24 = sadd.s32 4294967294, %s1043_s22   ;;  %s1043_s22 = sphi %s1095_s22, %s20_s22   ;;  %s1039_s21 = sphi %s1093_s21, %s1445_s21   ;;  %s1035_s20 = sphi %s1091_s20, %s1444_s20   ;;  %s1031_s19 = sphi %s1089_s19, %s1443_s19   ;;  %s1027_s18 = sphi %s1087_s18, %s1442_s18   ;;  %s1023_s17 = sphi %s1085_s17, %s1441_s17   ;;  %s1019_s16 = sphi %s1083_s16, %s1440_s16   ;;  %s1015_s15 = sphi %s1081_s15, %s1439_s15  }
   0x8   : > { %s29_s25 = sadd.s32 1, %s1035_s20  ;;  %s32_s26 = sadd.s32 1, %s1039_s21 }
   0x9   : > { %p30_p0 = scmp.ge.s32.totalorder %s29_s25, 2  ;;  %s41_s27 = sadd.s32 1, %s1023_s17 }
   0xa   : > { %p48_p1 = scmp.ne.s32.totalorder %s1023_s17, %s1019_s16  ;;  %p49_p2 = scmp.eq.s32.totalorder %s1043_s22, 0 }
   0xb   : > { %s1447_s25 = smov (%p30_p0, %s29_s25), 0  ;;  %s1449_s26 = smov (!%p30_p0, %s32_s26), %s1039_s21 }
   0xc   : > { %1428 = sst [smem:[#allocation8_spill]] %s1447_s25  ;;  %s37_s28 = ssub.s32 %s1035_s20, %s1447_s25 }
   0xd   : > { %p1134_p3 = por %p49_p2, %p48_p1  ;;  %p34_p4 = scmp.ge.s32.totalorder %s1449_s26, 2 }
   0xe   : > { %p54_p5 = scmp.ne.s32.totalorder %s1019_s16, %s1015_s15  ;;  %p55_p6 = scmp.eq.s32.totalorder %s725_s23, 0 }
   0xf   : > { %p143_p7 = scmp.eq.s32.totalorder %s725_s23, 3  ;;  %s1451_s26 = smov (%p34_p4, %s1449_s26), 0 }
  0x10   : > { %1430 = sst [smem:[#allocation9_spill]] %s1451_s26  ;;  %p1142_p8 = por %p55_p6, %p54_p5 }
  0x11   : > { %p1146_p9 = por %p143_p7, %p48_p1  ;;  %s36_s6 = ssub.s32 %s1039_s21, %s1451_s26 }
  0x12   : > { %p149_p10 = scmp.eq.s32.totalorder %s726_s24, 3  ;;  %s38_s7 = sor.u32 %s37_s28, %s36_s6 }
  0x13   : > { %s1432_s5 = scalar_select %p1146_p9, 1, 0 }
  0x14   : > { %p39_p11 = scmp.eq.s32.totalorder %s38_s7, 0  ;;  %p1152_p12 = por %p149_p10, %p54_p5 }
  0x15   : > { %p776_p13 = scmp.lt.s32.totalorder %s1043_s22, 4  ;;  %s178_s9 = sand.u32 1, %s1023_s17  }
  0x16   : > { %s1433_s8 = scalar_select %p1152_p12, 1, 0 }
  0x17   : > { %s1159_s10 = scalar_select %p39_p11, %s1023_s17, %s41_s27  }
  0x18   : > { %s760_s11 = smul.u32 48, %s178_s9  ;;  %p1164_p0 = pnand %p776_p13, %p1134_p3 }
  0x19   : > { %s761_s12 = smul.u32 6, %s1035_s20  ;;  %s1176_s29 = scalar_lea.sflag [#allocation3], %s178_s9 }
  0x1a   : > { %s762_s14 = smul.u32 12, %s1039_s21  ;;  %s182_s23 = scalar_lea.vmem [#allocation2], %s760_s11 }
  0x1b   : > { %s191_s24 = sshll.u32 %s182_s23, 4  ;;  %p917_p2 = pneg %p1164_p0  ;;  %s1169_s24 = int_to_ptr.vmem [resolvable:$true] %s191_s24 }
  0x1c   : > { %s188_s28 = sadd.s32 %s762_s14, %s761_s12  ;;  %s920_s26 = scalar_lea.hbm %s1420_s0, 3072 }
  0x1d   : > { %s729_s6 = sshll.u32 %s188_s28, 7 }
  0x1e   : > { %s1174_s27 = scalar_lea.hbm %s1420_s0, %s729_s6 }
  0x1f   : > { %s915_s25 = scalar_lea.hbm %s1174_s27, 768  ;;  %p921_p5 = scmp.lt.u32.totalorder %s1174_s27, %s1420_s0 }
  0x20   : > { %p916_p1 = scmp.ne.s32.totalorder %s1174_s27, %s915_s25  ;;  %p922_p6 = scmp.lt.u32.totalorder %s920_s26, %s915_s25 }
  0x21   : > { %p924_p10 = scmp.lt.u32.totalorder %s915_s25, %s1174_s27 }
  0x22   : > { %p918_p3 = pnand %p917_p2, %p916_p1  ;;  %p923_p7 = por %p922_p6, %p921_p5 }
  0x24   : > { %p919_p4 = pneg %p918_p3  ;;  %p925_p11 = por %p924_p10, %p923_p7 }
  0x26   : > { %p926_p13 = pnand %p925_p11, %p919_p4 }
  0x28   : > { %929 = shalt.err (!%p926_p13)
}
  0x29   : > { %s930_s9 = scalar_lea.vmem %s1169_s24, 768  ;;  %s1045_s28 = smov [#allocation2]  }
  0x2a   : > { %p931_p1 = scmp.ne.s32.totalorder %s1169_s24, %s930_s9  ;;  %s935_s6 = sshll.u32 %s1045_s28, 4  ;;  %s936_s6 = int_to_ptr.vmem [resolvable:$false] %s935_s6 }
  0x2b   : > { %s937_s7 = scalar_lea.vmem %s936_s6, 1536  ;;  %p938_p9 = scmp.lt.s32.totalorder %s1169_s24, %s936_s6 }
  0x2c   : > { %p933_p3 = pnand %p931_p1, %p917_p2  ;;  %p939_p5 = scmp.lt.s32.totalorder %s937_s7, %s930_s9 }
  0x2e   : > { %p934_p12 = pneg %p933_p3  ;;  %p940_p6 = por %p939_p5, %p938_p9 }
  0x30   : > { %p941_p7 = pnand %p940_p6, %p934_p12 }
  0x32   : > { %944 = shalt.err (!%p941_p7)
}
  0x33   : > { %s1046_s25 = smov 384   ;;  %s1047_s11 = smov 24  }
  0x34   : > { %771 = dma.hbm_to_vmem [thread:$0]  (!%p1164_p0), %s1174_s27, 768, %s1169_s24, %s1176_s29, %s1046_s25, %s1046_s25, %s1047_s11  }
  0x35   : > { %p730_p2 = scmp.ge.s32.totalorder %s1043_s22, 1  ;;  %p199_p4 = scmp.lt.s32.totalorder %s1043_s22, 5 }
  0x37   : > { %p200_p10 = pnand %p730_p2, %p199_p4 }
  0x38   : > { %s1207_s12 = sand.u32 (!%p200_p10), 1, %s1019_s16  }
  0x39   : > { %203 = sbr.rel (%p200_p10) target bundleno = 489 (0x1e9), region = 36  ;;  %s206_s14 = scalar_lea.sflag (!%p200_p10), [#allocation3], %s1207_s12 }
  0x3a   : > { %s763_s26 = smul.u32 (!%p200_p10), 48, %s1207_s12 }
  0x3c   : > { %s209_s23 = scalar_lea.vmem (!%p200_p10), [#allocation2], %s763_s26 }
  0x40   : > { %1006 = dma.done.wait (%p1142_p8), %s206_s14, 768  }
  0x41   : > { %1008 = vsyncadd (%p1142_p8), %s206_s14, 4294966528  ;;  %v236_v0 = vld [vmem:[%s209_s23 + $0x8] sm:$0xff]  ;;  %v239_v1 = vld [vmem:[%s209_s23 + $0x10] sm:$0xff]  ;;  %s1048_s13 = smov 112   ;;  %v1049_v11 = vmov 0.0   ;;  %s1050_s30 = smov 96  }
  0x42   : > { %v235_v2 = vld [vmem:[%s209_s23] sm:$0xff]  ;;  %v851_v3 = vpack.i.bf16 %v239_v1, %v236_v0  ;;  %v237_v4 = vld [vmem:[%s209_s23 + $0x18] sm:$0xff]  ;;  %v240_v6 = vld [vmem:[%s209_s23 + $0x28] sm:$0xff]  ;;  %370 = vmatprep.mubr.f32.mxu0 %v1049_v11  ;;  %382 = vmatprep.mubr.f32.mxu1 %v1049_v11  ;;  %v1051_v12 = vmov 0   ;;  %vm259_vm0 = vcmask 916480   ;;  %vm280_vm1 = vcmask 785408  }
  0x43   : > { %v238_v5 = vld [vmem:[%s209_s23 + $0x20] sm:$0xff]  ;;  %v861_v7 = vpack.i.bf16 %v237_v4, %v235_v2  ;;  %v744_v10 = vpack.c.bf16 %v237_v4, %v235_v2  ;;  %881 = vset.pattern.permute.xlu0 %v1051_v12  ;;  %882 = vset.pattern.permute.xlu1 %v1051_v12  ;;  %v548_v14 = vld [vmem:[%s1422_s2 + $0x8] sm:$0xff]  ;;  %v550_v15 = vld [vmem:[%s1422_s2 + $0x18] sm:$0xff]  ;;  %vm293_vm2 = vcmask 392192   ;;  %s731_s14 = sshll.u32 %s1207_s12, 6  ;;  %s620_s28 = scalar_lea.sflag [#allocation4], %s1207_s12 }
  0x44   : > { %852 = vrot.lane.b32.xlu0 %v851_v3, %s1048_s13  ;;  %v856_v8 = vpack.i.bf16 %v240_v6, %v238_v5  ;;  %v742_v9 = vpack.c.bf16 %v238_v5, %v236_v0  ;;  %v547_v13 = vld [vmem:[%s1422_s2] sm:$0xff]  ;;  %v549_v16 = vld [vmem:[%s1422_s2 + $0x10] sm:$0xff]  ;;  %v580_v17 = vld [vmem:[%s1423_s3 + $0x8] sm:$0xff]  ;;  %s1339_s23 = scalar_lea.vmem [#allocation5], %s731_s14  ;;  %p1435_p9 = scmp.ne.s32.totalorder %s1432_s5, 0 }
  0x45   : > { %862 = vrot.lane.b32.xlu1 %v861_v7, %s1048_s13  ;;  %v579_v18 = vld [vmem:[%s1423_s3] sm:$0xff]  ;;  %v582_v19 = vld [vmem:[%s1423_s3 + $0x18] sm:$0xff]  ;;  %v581_v20 = vld [vmem:[%s1423_s3 + $0x10] sm:$0xff]  ;;  %s1052_s7 = smov [#allocation5]  }
  0x46   : > { %743 = vmatprep.subr.bf16.mxu0 %v742_v9  ;;  %754 = vmatprep.subr.bf16.mxu1 %v742_v9  ;;  %v289_v51 = vld [vmem:[%s1421_s1] sm:$0xff]  ;;  %v291_v52 = vld [vmem:[%s1421_s1 + $0x10] sm:$0xff]  ;;  %v290_v53 = vld [vmem:[%s1421_s1 + $0x8] sm:$0xff]  ;;  %s949_s25 = sshll.u32 %s1052_s7, 4  ;;  %s950_s25 = int_to_ptr.vmem [resolvable:$false] %s949_s25 }
  0x47   : > { %745 = vmatpush1.bf16.msra.mxu0 %v744_v10  ;;  %757 = vmatpush1.bf16.msra.mxu1 %v744_v10  ;;  %v292_v54 = vld [vmem:[%s1421_s1 + $0x18] sm:$0xff]  ;;  %s951_s11 = scalar_lea.vmem %s950_s25, 2048 }
  0x48   : > { %857 = vrot.lane.b32.xlu0 %v856_v8, %s1048_s13  ;;  %s737_s13 = sshll.u32 %s1027_s18, 1  ;;  %s635_s18 = sshll.u32 %s1339_s23, 4  ;;  %s1358_s18 = int_to_ptr.vmem [resolvable:$true] %s635_s18 }
  0x49   : > { %867 = vrot.lane.b32.xlu1 %v851_v3, %s1050_s30  ;;  %s945_s6 = scalar_lea.vmem %s1358_s18, 1024  ;;  %p952_p11 = scmp.lt.s32.totalorder %s1358_s18, %s950_s25 }
  0x4a   : > { %p946_p8 = scmp.ne.s32.totalorder %s1358_s18, %s945_s6  ;;  %p953_p13 = scmp.lt.s32.totalorder %s951_s11, %s945_s6 }
  0x4c   : > { %872 = vrot.lane.b32.xlu0 %v856_v8, %s1050_s30  ;;  %p947_p12 = pnand %p946_p8, %p1435_p9  ;;  %p954_p1 = por %p953_p13, %p952_p11 }
  0x4d   : > { %877 = vrot.lane.b32.xlu1 %v861_v7, %s1050_s30  ;;  %s738_s30 = sshll.u32 %s1031_s19, 4 }
  0x4e   : > { %s632_s24 = sadd.s32 %s738_s30, %s737_s13  ;;  %p948_p0 = pneg %p947_p12 }
  0x4f   : > { %s739_s19 = sshll.u32 %s632_s24, 7 }
  0x50   : > { %553 = vperm.xlu0 %881, %v547_v13   ;;  %s1364_s9 = scalar_lea.hbm %s1424_s4, %s739_s19  ;;  %p955_p3 = pnand %p954_p1, %p948_p0 }
  0x51   : > { %558 = vperm.xlu1 %882, %v548_v14  }
  0x54   : > { %568 = vperm.xlu0 %881, %v550_v15  }
  0x55   : > { %563 = vperm.xlu1 %882, %v549_v16  }
  0x58   : > { %590 = vperm.xlu0 %881, %v580_v17  }
  0x59   : > { %585 = vperm.xlu1 %882, %v579_v18  }
  0x5c   : > { %600 = vperm.xlu0 %881, %v582_v19  }
  0x5d   : > { %595 = vperm.xlu1 %882, %v581_v20  }
  0xb6   : > { %v853_v21 = vpop.permute.xlu0 %852 }
  0xb7   : > { %v863_v22 = vpop.permute.xlu1 %862  ;;  %v855_v23 = vunpack.i.h.bf16 %v853_v21  ;;  %v854_v24 = vunpack.i.l.bf16 %v853_v21 }
  0xb8   : > { %v864_v25 = vunpack.i.l.bf16 %v863_v22  ;;  %v865_v27 = vunpack.i.h.bf16 %v863_v22 }
  0xb9   : > { %v261_v31 = vsel %vm259_vm0, %v854_v24, %v855_v23 }
  0xba   : > { %v858_v26 = vpop.permute.xlu0 %857  ;;  %v260_v32 = vsel %vm259_vm0, %v864_v25, %v854_v24 }
  0xbb   : > { %v860_v28 = vunpack.i.h.bf16 %v858_v26  ;;  %v859_v29 = vunpack.i.l.bf16 %v858_v26  ;;  %v868_v30 = vpop.permute.xlu1 %867 }
  0xbc   : > { %v870_v33 = vunpack.i.h.bf16 %v868_v30  ;;  %v869_v34 = vunpack.i.l.bf16 %v868_v30 }
  0xbd   : > { %v263_v35 = vsel %vm259_vm0, %v859_v29, %v860_v28  ;;  %v262_v36 = vsel %vm259_vm0, %v865_v27, %v859_v29 }
  0xbe   : > { %v873_v37 = vpop.permute.xlu0 %872  ;;  %v746_v38 = vpack.c.bf16 %v263_v35, %v261_v31  ;;  %v748_v39 = vpack.c.bf16 %v262_v36, %v260_v32  ;;  %v282_v45 = vsel %vm280_vm1, %v869_v34, %v870_v33 }
  0xbf   : > { %v875_v40 = vunpack.i.h.bf16 %v873_v37  ;;  %v874_v41 = vunpack.i.l.bf16 %v873_v37  ;;  %v878_v42 = vpop.permute.xlu1 %877 }
  0xc0   : > { %v880_v43 = vunpack.i.h.bf16 %v878_v42  ;;  %v879_v44 = vunpack.i.l.bf16 %v878_v42  ;;  %747 = vmatprep.subr.bf16.mxu0 %v746_v38  ;;  %755 = vmatprep.subr.bf16.mxu1 %v746_v38 }
  0xc1   : > { %749 = vmatpush1.bf16.msra.mxu0 %v748_v39  ;;  %758 = vmatpush1.bf16.msra.mxu1 %v748_v39  ;;  %v284_v46 = vsel %vm280_vm1, %v874_v41, %v875_v40 }
  0xc2   : > { %v750_v47 = vpack.c.bf16 %v284_v46, %v282_v45  ;;  %v281_v48 = vsel %vm280_vm1, %v879_v44, %v869_v34  ;;  %v283_v49 = vsel %vm280_vm1, %v880_v43, %v874_v41 }
  0xc3   : > { %v752_v50 = vpack.c.bf16 %v283_v49, %v281_v48 }
  0xc4   : > { %751 = vmatprep.subr.bf16.mxu0 %v750_v47  ;;  %756 = vmatprep.subr.bf16.mxu1 %v750_v47 }
  0xc5   : > { %753 = vmatpush1.bf16.msra.mxu0 %v752_v50  ;;  %759 = vmatpush1.bf16.msra.mxu1 %v752_v50 }
  0xc8   : > { %732 = vmatmul.mubr.msk.f32.vlgmr.msra.gmra.mrb[0].mxu0 %vm293_vm2, %v289_v51  ;;  %734 = vmatmul.mubr.msk.f32.vlgmr.msra.gmra.mrb[0].mxu1 %vm293_vm2, %v291_v52 }
  0xc9   : > { %376 = vmatprep.mubr.f32.mxu0 %v1049_v11  ;;  %388 = vmatprep.mubr.f32.mxu1 %v1049_v11 }
  0xcc   : > { %733 = vmatmul.mubr.msk.f32.gmra.mrb[2].mxu0 %vm293_vm2, %v290_v53  ;;  %735 = vmatmul.mubr.msk.f32.gmra.mrb[2].mxu1 %vm293_vm2, %v292_v54 }
 0x19b   : > { %v1255_v55 = vpop.f32.mrb[0].mxu0  ;;  %v1257_v56 = vpop.f32.mrb[0].mxu1 }
 0x19c   : > { %v395_v57 = vand.u32 2147483647, %v1255_v55  ;;  %v399_v58 = vand.u32 2147483647, %v1257_v56  ;;  %v1261_v59 = vpop.f32.mrb[1].mxu0  ;;  %v1263_v60 = vpop.f32.mrb[1].mxu1 }
 0x19d   : > { %v396_v63 = vand.u32 2147483647, %v1261_v59  ;;  %v400_v0 = vand.u32 2147483647, %v1263_v60  ;;  %vm443_vm3 = vcmp.ge.f32.partialorder %v1255_v55, 0.0  ;;  %vm447_vm4 = vcmp.ge.f32.partialorder %v1257_v56, 0.0 }
 0x19e   : > { %v403_v61 = vsub.f32 0.0, %v395_v57  ;;  %v407_v62 = vsub.f32 0.0, %v399_v58  ;;  %vm444_vm5 = vcmp.ge.f32.partialorder %v1261_v59, 0.0  ;;  %vm448_vm6 = vcmp.ge.f32.partialorder %v1263_v60, 0.0 }
 0x19f   : > { %v1267_v1 = vpop.f32.mrb[2].mxu0  ;;  %v1269_v2 = vpop.f32.mrb[2].mxu1  ;;  %v404_v5 = vsub.f32 0.0, %v396_v63  ;;  %v408_v6 = vsub.f32 0.0, %v400_v0 }
 0x1a0   : > { %v411_v3 = vmul.f32 1.442695, %v403_v61  ;;  %v419_v4 = vmul.f32 1.442695, %v407_v62  ;;  %v397_v7 = vand.u32 2147483647, %v1267_v1 }
 0x1a1   : > { %v401_v8 = vand.u32 2147483647, %v1269_v2  ;;  %v413_v9 = vmul.f32 1.442695, %v404_v5  ;;  %v1273_v10 = vpop.f32.mrb[3].mxu0  ;;  %v1275_v11 = vpop.f32.mrb[3].mxu1 }
 0x1a2   : > { %883 = vpow2.f32 %v411_v3  ;;  %v421_v12 = vmul.f32 1.442695, %v408_v6  ;;  %v405_v13 = vsub.f32 0.0, %v397_v7  ;;  %v398_v15 = vand.u32 2147483647, %v1273_v10  ;;  %v1301_v7 = vpop.permute.xlu1 %558 }
 0x1a3   : > { %885 = vpow2.f32 %v419_v4  ;;  %v409_v14 = vsub.f32 0.0, %v401_v8  ;;  %v402_v16 = vand.u32 2147483647, %v1275_v11  ;;  %vm445_vm7 = vcmp.ge.f32.partialorder %v1267_v1, 0.0 }
 0x1a4   : > { %887 = vpow2.f32 %v413_v9  ;;  %v415_v17 = vmul.f32 1.442695, %v405_v13  ;;  %v406_v19 = vsub.f32 0.0, %v398_v15  ;;  %vm449_vm8 = vcmp.ge.f32.partialorder %v1269_v2, 0.0 }
 0x1a5   : > { %889 = vpow2.f32 %v421_v12  ;;  %v423_v18 = vmul.f32 1.442695, %v409_v14  ;;  %v410_v20 = vsub.f32 0.0, %v402_v16  ;;  %vm446_vm9 = vcmp.ge.f32.partialorder %v1273_v10, 0.0 }
 0x1a6   : > { %891 = vpow2.f32 %v415_v17  ;;  %v417_v21 = vmul.f32 1.442695, %v406_v19  ;;  %vm450_vm10 = vcmp.ge.f32.partialorder %v1275_v11, 0.0 }
 0x1a7   : > { %893 = vpow2.f32 %v423_v18  ;;  %v425_v22 = vmul.f32 1.442695, %v410_v20 }
 0x1a8   : > { %895 = vpow2.f32 %v417_v21 }
 0x1a9   : > { %897 = vpow2.f32 %v425_v22 }
 0x1ac   : > { %v884_v23 = vpop.eup %883 }
 0x1ad   : > { %v886_v24 = vpop.eup %885  ;;  %v427_v25 = vadd.f32 2.0, %v884_v23  ;;  %v451_v26 = vmul.f32 2.0, %v884_v23 }
 0x1ae   : > { %v888_v27 = vpop.eup %887  ;;  %v431_v28 = vadd.f32 2.0, %v886_v24  ;;  %v455_v29 = vmul.f32 2.0, %v886_v24 }
 0x1af   : > { %v890_v30 = vpop.eup %889  ;;  %v435_v31 = vmul.f32 %v884_v23, %v427_v25  ;;  %v459_v32 = vadd.f32 1.0, %v451_v26  ;;  %v475_v33 = vmul.f32 %v884_v23, %v451_v26  ;;  %v428_v34 = vadd.f32 2.0, %v888_v27 }
 0x1b0   : > { %v439_v35 = vmul.f32 %v886_v24, %v431_v28  ;;  %v463_v36 = vadd.f32 1.0, %v455_v29  ;;  %v479_v37 = vmul.f32 %v886_v24, %v455_v29  ;;  %v452_v38 = vmul.f32 2.0, %v888_v27  ;;  %v892_v39 = vpop.eup %891  ;;  %v1317_v29 = vpop.permute.xlu1 %563 }
 0x1b1   : > { %v1283_v40 = vsel %vm443_vm3, %v459_v32, %v435_v31  ;;  %v483_v41 = vsel %vm443_vm3, %v475_v33, 2.0  ;;  %v436_v42 = vmul.f32 %v888_v27, %v428_v34  ;;  %v432_v43 = vadd.f32 2.0, %v890_v30  ;;  %v894_v50 = vpop.eup %893 }
 0x1b2   : > { %v491_v44 = vadd.f32 %v483_v41, %v1283_v40  ;;  %v1290_v45 = vsel %vm447_vm4, %v463_v36, %v439_v35  ;;  %v487_v46 = vsel %vm447_vm4, %v479_v37, 2.0  ;;  %v460_v48 = vadd.f32 1.0, %v452_v38  ;;  %v896_v0 = vpop.eup %895 }
 0x1b3   : > { %v495_v47 = vadd.f32 %v487_v46, %v1290_v45  ;;  %v476_v49 = vmul.f32 %v888_v27, %v452_v38  ;;  %v440_v51 = vmul.f32 %v890_v30, %v432_v43  ;;  %v456_v52 = vmul.f32 2.0, %v890_v30  ;;  %v898_v8 = vpop.eup %897 }
 0x1b4   : > { %899 = vrcp.f32 %v491_v44  ;;  %v429_v53 = vadd.f32 2.0, %v892_v39  ;;  %v1297_v54 = vsel %vm444_vm5, %v460_v48, %v436_v42  ;;  %v453_v58 = vmul.f32 2.0, %v892_v39 }
 0x1b5   : > { %901 = vrcp.f32 %v495_v47  ;;  %v484_v57 = vsel %vm444_vm5, %v476_v49, 2.0  ;;  %v464_v62 = vadd.f32 1.0, %v456_v52  ;;  %v480_v63 = vmul.f32 %v890_v30, %v456_v52 }
 0x1b6   : > { %v492_v61 = vadd.f32 %v484_v57, %v1297_v54  ;;  %v437_v3 = vmul.f32 %v892_v39, %v429_v53  ;;  %v461_v4 = vadd.f32 1.0, %v453_v58  ;;  %v477_v5 = vmul.f32 %v892_v39, %v453_v58  ;;  %v586_v57 = vpop.permute.xlu1 %585 }
 0x1b7   : > { %v433_v6 = vadd.f32 2.0, %v894_v50  ;;  %v1305_v9 = vsel %vm448_vm6, %v464_v62, %v440_v51  ;;  %v488_v12 = vsel %vm448_vm6, %v480_v63, 2.0  ;;  %v457_v13 = vmul.f32 2.0, %v894_v50  ;;  %v554_v51 = vpop.permute.xlu0 %553 }
 0x1b8   : > { %903 = vrcp.f32 %v492_v61  ;;  %v496_v14 = vadd.f32 %v488_v12, %v1305_v9  ;;  %v1310_v15 = vsel %vm445_vm7, %v461_v4, %v437_v3  ;;  %v485_v16 = vsel %vm445_vm7, %v477_v5, 2.0 }
 0x1b9   : > { %v493_v17 = vadd.f32 %v485_v16, %v1310_v15  ;;  %v441_v18 = vmul.f32 %v894_v50, %v433_v6  ;;  %v465_v19 = vadd.f32 1.0, %v457_v13  ;;  %v481_v20 = vmul.f32 %v894_v50, %v457_v13 }
 0x1ba   : > { %905 = vrcp.f32 %v496_v14  ;;  %v430_v21 = vadd.f32 2.0, %v896_v0  ;;  %v454_v22 = vmul.f32 2.0, %v896_v0  ;;  %v434_v24 = vadd.f32 2.0, %v898_v8 }
 0x1bb   : > { %907 = vrcp.f32 %v493_v17  ;;  %v1314_v23 = vsel %vm449_vm8, %v465_v19, %v441_v18  ;;  %v458_v25 = vmul.f32 2.0, %v898_v8  ;;  %v489_v26 = vsel %vm449_vm8, %v481_v20, 2.0  ;;  %v569_v12 = vpop.permute.xlu0 %568  ;;  %v596_v19 = vpop.permute.xlu1 %595 }
 0x1bc   : > { %v438_v27 = vmul.f32 %v896_v0, %v430_v21  ;;  %v462_v28 = vadd.f32 1.0, %v454_v22  ;;  %v497_v31 = vadd.f32 %v489_v26, %v1314_v23  ;;  %v478_v32 = vmul.f32 %v896_v0, %v454_v22 }
 0x1bd   : > { %v442_v33 = vmul.f32 %v898_v8, %v434_v24  ;;  %v466_v34 = vadd.f32 1.0, %v458_v25  ;;  %v482_v38 = vmul.f32 %v898_v8, %v458_v25  ;;  %v531_v52 = vmul.f32 %v1283_v40, %v1255_v55 }
 0x1be   : > { %v900_v30 = vpop.eup %899  ;;  %v1320_v37 = vsel %vm446_vm9, %v462_v28, %v438_v27  ;;  %909 = vrcp.f32 %v497_v31  ;;  %v486_v41 = vsel %vm446_vm9, %v478_v32, 2.0  ;;  %v535_v58 = vmul.f32 %v1290_v45, %v1257_v56 }
 0x1bf   : > { %v902_v35 = vpop.eup %901  ;;  %v507_v36 = vmul.f32 %v900_v30, %v491_v44  ;;  %v494_v42 = vadd.f32 %v486_v41, %v1320_v37  ;;  %v1324_v43 = vsel %vm450_vm10, %v466_v34, %v442_v33  ;;  %v490_v46 = vsel %vm450_vm10, %v482_v38, 2.0 }
 0x1c0   : > { %v511_v39 = vmul.f32 %v902_v35, %v495_v47  ;;  %v498_v50 = vadd.f32 %v490_v46, %v1324_v43  ;;  %v532_v8 = vmul.f32 %v1297_v54, %v1261_v59  ;;  %v536_v21 = vmul.f32 %v1305_v9, %v1263_v60 }
 0x1c1   : > { %v515_v48 = vsub.f32 2.0, %v507_v36  ;;  %911 = vrcp.f32 %v494_v42  ;;  %v533_v59 = vmul.f32 %v1310_v15, %v1267_v1  ;;  %v591_v15 = vpop.permute.xlu0 %590 }
 0x1c2   : > { %v904_v49 = vpop.eup %903  ;;  %v519_v44 = vsub.f32 2.0, %v511_v39  ;;  %913 = vrcp.f32 %v498_v50 }
 0x1c3   : > { %v508_v47 = vmul.f32 %v904_v49, %v492_v61  ;;  %v523_v53 = vmul.f32 %v900_v30, %v515_v48 }
 0x1c4   : > { %v527_v62 = vmul.f32 %v902_v35, %v519_v44  ;;  %v906_v63 = vpop.eup %905 }
 0x1c5   : > { %v516_v0 = vsub.f32 2.0, %v508_v47  ;;  %v539_v3 = vmul.f32 %v531_v52, %v523_v53  ;;  %v908_v4 = vpop.eup %907  ;;  %v512_v5 = vmul.f32 %v906_v63, %v496_v14 }
 0x1c6   : > { %v543_v6 = vmul.f32 %v535_v58, %v527_v62  ;;  %v509_v55 = vmul.f32 %v908_v4, %v493_v17 }
 0x1c7   : > { %v524_v40 = vmul.f32 %v904_v49, %v516_v0  ;;  %v571_v61 = vmul.f32 %v554_v51, %v539_v3  ;;  %v520_v13 = vsub.f32 2.0, %v512_v5  ;;  %v601_v49 = vpop.permute.xlu0 %600 }
 0x1c8   : > { %v575_v16 = vmul.f32 %v1317_v29, %v543_v6  ;;  %v517_v45 = vsub.f32 2.0, %v509_v55  ;;  %v910_v20 = vpop.eup %909 }
 0x1c9   : > { %v540_v56 = vmul.f32 %v532_v8, %v524_v40  ;;  %v603_v18 = vadd.f32 %v586_v57, %v571_v61  ;;  %v528_v14 = vmul.f32 %v906_v63, %v520_v13  ;;  %v513_v54 = vmul.f32 %v910_v20, %v497_v31 }
 0x1ca   : > { %v607_v22 = vadd.f32 %v596_v19, %v575_v16  ;;  %v525_v24 = vmul.f32 %v908_v4, %v517_v45  ;;  %v537_v31 = vmul.f32 %v1314_v23, %v1269_v2  ;;  %v538_v2 = vmul.f32 %v1324_v43, %v1275_v11 }
 0x1cb   : > { %v572_v17 = vmul.f32 %v554_v51, %v540_v56  ;;  %611 = vst [vmem:[%s1339_s23] sm:$0xff] %v603_v18  ;;  %v544_v25 = vmul.f32 %v536_v21, %v528_v14  ;;  %v912_v26 = vpop.eup %911  ;;  %v521_v9 = vsub.f32 2.0, %v513_v54 }
 0x1cc   : > { %615 = vst [vmem:[%s1339_s23 + $0x20] sm:$0xff] %v607_v22  ;;  %v541_v60 = vmul.f32 %v533_v59, %v525_v24  ;;  %v914_v28 = vpop.eup %913  ;;  %v510_v30 = vmul.f32 %v912_v26, %v494_v42 }
 0x1cd   : > { %v604_v27 = vadd.f32 %v586_v57, %v572_v17  ;;  %v576_v1 = vmul.f32 %v1317_v29, %v544_v25  ;;  %v514_v32 = vmul.f32 %v914_v28, %v498_v50  ;;  %v529_v34 = vmul.f32 %v910_v20, %v521_v9 }
 0x1ce   : > { %v573_v33 = vmul.f32 %v1301_v7, %v541_v60  ;;  %v518_v35 = vsub.f32 2.0, %v510_v30  ;;  %v534_v29 = vmul.f32 %v1320_v37, %v1273_v10 }
 0x1cf   : > { %612 = vst [vmem:[%s1339_s23 + $0x8] sm:$0xff] %v604_v27  ;;  %v608_v36 = vadd.f32 %v596_v19, %v576_v1  ;;  %v522_v38 = vsub.f32 2.0, %v514_v32  ;;  %v545_v39 = vmul.f32 %v537_v31, %v529_v34 }
 0x1d0   : > { %v605_v41 = vadd.f32 %v591_v15, %v573_v33  ;;  %v526_v42 = vmul.f32 %v912_v26, %v518_v35 }
 0x1d1   : > { %616 = vst [vmem:[%s1339_s23 + $0x28] sm:$0xff] %v608_v36  ;;  %v530_v23 = vmul.f32 %v914_v28, %v522_v38  ;;  %v577_v46 = vmul.f32 %v569_v12, %v545_v39 }
 0x1d2   : > { %613 = vst [vmem:[%s1339_s23 + $0x10] sm:$0xff] %v605_v41  ;;  %v542_v48 = vmul.f32 %v534_v29, %v526_v42 }
 0x1d3   : > { %v546_v50 = vmul.f32 %v538_v2, %v530_v23  ;;  %v609_v51 = vadd.f32 %v601_v49, %v577_v46 }
 0x1d4   : > { %v574_v10 = vmul.f32 %v1301_v7, %v542_v48 }
 0x1d5   : > { %v578_v37 = vmul.f32 %v569_v12, %v546_v50  ;;  %617 = vst [vmem:[%s1339_s23 + $0x30] sm:$0xff] %v609_v51 }
 0x1d6   : > { %v606_v11 = vadd.f32 %v591_v15, %v574_v10 }
 0x1d7   : > { %v610_v43 = vadd.f32 %v601_v49, %v578_v37 }
 0x1d8   : > { %614 = vst [vmem:[%s1339_s23 + $0x18] sm:$0xff] %v606_v11 }
 0x1d9   : > { %618 = vst [vmem:[%s1339_s23 + $0x38] sm:$0xff] %v610_v43 }
 0x1da   : > { %958 = shalt.err (!%p955_p3)
}
 0x1db   : > { %s959_s26 = scalar_lea.hbm %s1364_s9, 1024  ;;  %s963_s13 = scalar_lea.hbm %s1424_s4, 4096 }
 0x1dc   : > { %p960_p5 = scmp.ne.s32.totalorder %s1364_s9, %s959_s26  ;;  %p964_p2 = scmp.lt.u32.totalorder %s1364_s9, %s1424_s4 }
 0x1dd   : > { %p965_p4 = scmp.lt.u32.totalorder %s963_s13, %s959_s26  ;;  %p967_p8 = scmp.lt.u32.totalorder %s959_s26, %s1364_s9 }
 0x1de   : > { %p961_p6 = pnand %p960_p5, %p1435_p9 }
 0x1df   : > { %p966_p10 = por %p965_p4, %p964_p2 }
 0x1e0   : > { %p962_p7 = pneg %p961_p6 }
 0x1e1   : > { %p968_p12 = por %p967_p8, %p966_p10 }
 0x1e3   : > { %p969_p0 = pnand %p968_p12, %p962_p7 }
 0x1e5   : > { %972 = shalt.err (!%p969_p0)
}
 0x1e6   : > { %s1053_s19 = smov 256   ;;  %s1054_s27 = smov 512  }
 0x1e7   : > { %s1055_s29 = smov 16  }
 0x1e8   : > { %766 = dma.vmem_to_hbm [thread:$0]  (%p1435_p9), %s1358_s18, 1024, %s1364_s9, %s620_s28, %s1053_s19, %s1054_s27, %s1055_s29  }
 0x1e9 PF: > { %p777_p11 = scmp.ge.s32.totalorder %s1043_s22, 2  ;;  %s650_s6 = sand.u32 1, %s1015_s15  }
 0x1ea   : > { %p1436_p13 = scmp.ne.s32.totalorder %s1433_s8, 0  ;;  %s651_s7 = scalar_lea.sflag [#allocation4], %s650_s6 }
 0x1ec   : > { %p773_p1 = pnand %p777_p11, %p1436_p13 }
 0x1ee   : > { %1010 = dma.done.wait (!%p773_p1), %s651_s7, 1024  }
 0x1ef   : > { %1012 = vsyncadd (!%p773_p1), %s651_s7, 4294966272  ;;  %s20_s22 = sadd.s32 1, %s1043_s22   ;;  %s1437_s5 = sld [smem:[#allocation8_spill]] }
 0x1f0   : > { %p17_p3 = scmp.ge.s32.totalorder %s20_s22, 6   ;;  %s1438_s12 = sld [smem:[#allocation9_spill]] }
 0x1f1   : > { %s1439_s15 = smov %s1019_s16  ;;  %s1440_s16 = smov %s1023_s17 }
 0x1f2   : > { %s1441_s17 = smov %s1159_s10  ;;  %s1442_s18 = smov %s1035_s20 }
 0x1f3   : > { %s1443_s19 = smov %s1039_s21  ;;  %19 = sbr.rel (!%p17_p3) target bundleno = 7 (0x7), region = 81 }
 0x1f5   : > { %s1444_s20 = smov %s1437_s5 }
 0x1f6   : > { %s1445_s21 = smov %s1438_s12 }
 0x1fa   :  { %656 = vsyncpa [#allocation3], 1 }
 0x1fb   :  { %658 = vsyncpa [#allocation3 + $0x1], 1 }
 0x1fc   :  { %659 = vsyncpa [#allocation4], 1 }
 0x1fd   :  { %661 = vsyncpa [#allocation4 + $0x1], 1 }

</bundles_post_ra>
